<compile_context>
chip_gen: v6e
topology: v6e:2x2x1
jax: 0.10.0
libtpu: 0.0.40
codegen_flags: <defaults>
</compile_context>

<pallas_src>
import math
import functools

import jax
import jax.numpy as jnp
import numpy as np
from jax.experimental import pallas as pl
from jax.experimental.pallas import tpu as pltpu

LN_EPS = 1e-5


# ----------------------------------------------------------------------------
# Glue: 2D sinusoidal position encoding (pure JAX, precomputed once at trace time).
# ----------------------------------------------------------------------------
def build_2d_sin_encoding(H, W, d_model):
    assert d_model % 2 == 0, "d_model should be even."
    d_h = d_model // 2
    d_w = d_model // 2
    row_pos = jnp.arange(H, dtype=jnp.float32)[:, None]
    col_pos = jnp.arange(W, dtype=jnp.float32)[:, None]
    div_h = jnp.exp(jnp.arange(0, d_h, 2, dtype=jnp.float32) * (-math.log(10000.0) / d_h))
    div_w = jnp.exp(jnp.arange(0, d_w, 2, dtype=jnp.float32) * (-math.log(10000.0) / d_w))
    row_enc = jnp.zeros((H, d_h), jnp.float32)
    row_enc = row_enc.at[:, 0::2].set(jnp.sin(row_pos * div_h))
    row_enc = row_enc.at[:, 1::2].set(jnp.cos(row_pos * div_h))
    col_enc = jnp.zeros((W, d_w), jnp.float32)
    col_enc = col_enc.at[:, 0::2].set(jnp.sin(col_pos * div_w))
    col_enc = col_enc.at[:, 1::2].set(jnp.cos(col_pos * div_w))
    pe = jnp.zeros((H, W, d_model), jnp.float32)
    pe = pe.at[:, :, :d_h].set(row_enc[:, None, :])
    pe = pe.at[:, :, d_h:].set(col_enc[None, :, :])
    return pe


# ----------------------------------------------------------------------------
# Fused kernel: `bb` batch elements per program (bb=1 on multi-TC chips,
# bb=B on single-TC chips).  Two inputs only: the x block and one constant slab.
# ----------------------------------------------------------------------------
def fission_kernel(x_ref, c_ref, out_ref, *, bb, S, D, H, N, P, off):
    hd = D // H
    NP = N * P
    BD = bb * D
    BHS = bb * H * S

    # ---- unpack the packed constant slab (static slices, no runtime index math)
    o = off
    qs = c_ref[o["qs"]: o["qs"] + NP, :D]          # pre-projected, pre-scaled queries
    khm = c_ref[o["khm"]: o["khm"] + BHS, :D]      # head block-diagonal mask for K
    wkv = c_ref[o["wkv"]: o["wkv"] + 2 * D, :D]    # fused K|V weight (PyTorch [out,in])
    ln_g = c_ref[o["ln"] + 0: o["ln"] + 1, :D]
    ln_b = c_ref[o["ln"] + 1: o["ln"] + 2, :D]
    on_g = c_ref[o["ln"] + 2: o["ln"] + 3, :D]
    on_b = c_ref[o["ln"] + 3: o["ln"] + 4, :D]
    bkv = c_ref[o["ln"] + 4: o["ln"] + 5, :2 * D]  # fused K|V bias
    res = c_ref[o["res"]: o["res"] + NP, :BD]      # pe + fused out bias (tiled per batch)
    vmsk = c_ref[o["vmsk"]: o["vmsk"] + BHS, :BD]  # batch x head block-diag mask for V
    seg = c_ref[o["seg"]: o["seg"] + BHS, :BHS]    # softmax segment-sum matrix
    wob = c_ref[o["wob"]: o["wob"] + BD, :BD]      # batch block-diag fused output weight^T

    # ---- input LayerNorm over the embedding dim (rows = bb*S tokens)
    x = x_ref[...]
    mu = jnp.mean(x, axis=-1, keepdims=True)
    var = jnp.mean(jnp.square(x - mu), axis=-1, keepdims=True)
    xn = (x - mu) * jax.lax.rsqrt(var + LN_EPS) * ln_g + ln_b

    # ---- fused K & V projection in ONE matmul: [bb*S, D] @ [D, 2D]
    kv = jax.lax.dot_general(xn, wkv, (((1,), (1,)), ((), ())),
                             preferred_element_type=jnp.float32) + bkv
    k = kv[:, :D]
    v = kv[:, D:]

    # ---- head-replicate rows (row order = (head, batch, seq)); mask to block-diag layout
    k_rep = jnp.concatenate([k] * H, axis=0)                     # [BHS, D]
    v_rep = jnp.concatenate([v] * H, axis=0)                     # [BHS, D]
    k_bd = k_rep * khm

    # ---- scores for all nodes / heads / batches in one matmul: [NP, BHS]
    scores = jax.lax.dot_general(qs, k_bd, (((1,), (1,)), ((), ())),
                                 preferred_element_type=jnp.float32)

    # ---- per (batch, head) segment softmax over the S key columns of each segment.
    # Softmax is shift invariant, so a single per-row max suffices for stability.
    e = jnp.exp(scores - jnp.max(scores, axis=-1, keepdims=True))
    denom = jnp.dot(e, seg, preferred_element_type=jnp.float32)  # segment sums, broadcast
    p = e / denom                                                # exact (no approx recip)

    # ---- PV for all heads/batches at once; V packed batch-and-head block-diagonally
    v_blk = jnp.concatenate([v_rep] * bb, axis=1) * vmsk         # [BHS, BD]
    attn = jnp.dot(p, v_blk, preferred_element_type=jnp.float32)  # [NP, BD]

    # ---- fused (attn out_proj o output_proj) + residual (pe + fused bias, precomputed)
    y = jnp.dot(attn, wob, preferred_element_type=jnp.float32) + res  # [NP, BD]

    # ---- per-batch output LayerNorm + ONE full-128-lane unmasked store per batch
    for b in range(bb):
        yb = y[:, b * D:(b + 1) * D]                             # [NP, D]
        mb = jnp.mean(yb, axis=-1, keepdims=True)
        vb = jnp.mean(jnp.square(yb - mb), axis=-1, keepdims=True)
        ybn = (yb - mb) * jax.lax.rsqrt(vb + LN_EPS) * on_g + on_b
        out_ref[b] = jnp.concatenate(
            [ybn[n * P:(n + 1) * P, :] for n in range(N)], axis=-1)   # [P, N*D]


# ----------------------------------------------------------------------------
# Wrapper: trace-time algebraic fusion, constant packing, single pallas_call.
# ----------------------------------------------------------------------------
def _align8(n):
    return (n + 7) // 8 * 8


def _single_tensorcore_chip():
    """True on single-TensorCore chips (v5e / v6e) where a batch grid is a pure
    serial loop and it pays to merge the batch into one program."""
    try:
        kind = jax.devices()[0].device_kind.lower()
    except Exception:
        return False
    return any(t in kind for t in
               ("v5 lite", "v5lite", "v5e", "v6 lite", "v6lite", "v6e"))


def fission_forward(x, params, num_nodes, par_length, num_heads,
                    batches_per_program=None):
    B, S, D = x.shape
    N, P, H = num_nodes, par_length, num_heads
    assert D % H == 0, "embedding_dim must be divisible by num_heads"
    assert D % 2 == 0, "embedding_dim must be even (2D sinusoidal PE)"
    hd = D // H
    NP = N * P

    # Layout requirements of this kernel (full-lane output store, (8,128) tiling).
    assert (N * D) % 128 == 0, "num_nodes*embedding_dim must be a multiple of 128"
    assert S % 8 == 0 and P % 8 == 0 and NP % 8 == 0, "S, P, N*P must be multiples of 8"

    if batches_per_program is None:
        # v5e/v6e: fold the whole batch into one program (single TC).
        # v7x & other multi-TC chips: grid=(B,) "parallel" splits the batch per core.
        batches_per_program = B if _single_tensorcore_chip() else 1
    bb = batches_per_program
    assert B % bb == 0
    BD, BHS = bb * D, bb * H * S

    # ---- trace-time algebraic fusion of the chained Linear layers ----------------
    wk_f = params["wk_a"] @ params["wk"]                    # attn-K(key_proj(.))
    bk_f = params["bk"] @ params["wk_a"].T + params["bk_a"]
    wv_f = params["wv_a"] @ params["wv"]                    # attn-V(value_proj(.))
    bv_f = params["bv"] @ params["wv_a"].T + params["bv_a"]
    wo_f = params["w_out"] @ params["wo_a"]                 # output_proj(attn-out(.))
    bo_f = params["bo_a"] @ params["w_out"].T + params["b_out"]

    wkv_f = jnp.concatenate([wk_f, wv_f], axis=0)           # [2D, D] fused K|V weight
    bkv_f = jnp.concatenate([bk_f, bv_f], axis=1)           # [1, 2D] fused K|V bias

    # Query path depends only on the constant positional encoding -> hoisted and
    # pre-scaled by 1/sqrt(head_dim).  Fused output bias folded into the residual.
    pe = build_2d_sin_encoding(N, P, D).reshape(NP, D)      # [NP, D], node-major rows
    qs = (pe @ params["wq_a"].T + params["bq_a"]) * (1.0 / math.sqrt(hd))
    resid = pe + bo_f
    resid_wide = jnp.tile(resid, (1, bb))                   # [NP, bb*D]

    # Batch block-diagonal fused output weight, already transposed for right-mult.
    wo_block = jnp.kron(jnp.eye(bb, dtype=jnp.float32), wo_f.T)   # [bb*D, bb*D]

    # ---- constant masks (pure numpy, depend only on shapes; hoisted out of kernel)
    rr = np.arange(BHS)
    head_of_row = rr // (bb * S)                 # row order is (head, batch, seq)
    batch_of_row = (rr // S) % bb
    col_d = np.arange(D)
    khm = (head_of_row[:, None] == (col_d // hd)[None, :]).astype(np.float32)
    col_bd = np.arange(BD)
    vmsk = ((batch_of_row[:, None] == (col_bd // D)[None, :]) &
            (head_of_row[:, None] == ((col_bd % D) // hd)[None, :])).astype(np.float32)
    seg = ((rr // S)[:, None] == (rr // S)[None, :]).astype(np.float32)

    # ---- pack everything into ONE replicated constant slab (single DMA) ----------
    off, r = {}, 0
    off["qs"] = r;   r = _align8(r + NP)
    off["khm"] = r;  r = _align8(r + BHS)
    off["wkv"] = r;  r = _align8(r + 2 * D)
    off["ln"] = r;   r = _align8(r + 5)          # ln_g, ln_b, on_g, on_b, bkv
    off["res"] = r;  r = _align8(r + NP)
    off["vmsk"] = r; r = _align8(r + BHS)
    off["seg"] = r;  r = _align8(r + BHS)
    off["wob"] = r;  r = _align8(r + BD)
    rows = r
    lanes = max(128, ((max(2 * D, BD, BHS) + 127) // 128) * 128)

    def put(slab, row, arr):
        arr = jnp.asarray(arr, jnp.float32)
        return slab.at[row:row + arr.shape[0], :arr.shape[1]].set(arr)

    slab = jnp.zeros((rows, lanes), jnp.float32)
    slab = put(slab, off["qs"], qs)
    slab = put(slab, off["khm"], khm)
    slab = put(slab, off["wkv"], wkv_f)
    slab = put(slab, off["ln"], jnp.concatenate(
        [params["ln_g"], params["ln_b"], params["on_g"], params["on_b"]], axis=0))
    slab = put(slab, off["ln"] + 4, bkv_f)
    slab = put(slab, off["res"], resid_wide)
    slab = put(slab, off["vmsk"], vmsk)
    slab = put(slab, off["seg"], seg)
    slab = put(slab, off["wob"], wo_block)

    kernel = functools.partial(fission_kernel, bb=bb, S=S, D=D, H=H, N=N, P=P, off=off)

    out = pl.pallas_call(
        kernel,
        out_shape=jax.ShapeDtypeStruct((B, P, N * D), jnp.float32),
        grid=(B // bb,),
        in_specs=[
            pl.BlockSpec((bb * S, D), lambda g: (g, 0)),      # x, flattened to [B*S, D]
            pl.BlockSpec((rows, lanes), lambda g: (0, 0)),    # packed constants, replicated
        ],
        out_specs=pl.BlockSpec((bb, P, N * D), lambda g: (g, 0, 0)),
        compiler_params=pltpu.CompilerParams(
            dimension_semantics=("parallel",)),               # multi-TC chips split the batch
    )(x.reshape(B * S, D), slab)

    # out[b, p, n*D + d]  ->  (B, N, P, D)
    return out.reshape(B, P, N, D).transpose(0, 2, 1, 3)


# ----------------------------------------------------------------------------
# Pure-JAX reference (mirrors the PyTorch module op-for-op) for correctness.
# ----------------------------------------------------------------------------
def reference(x, p, N, P, H):
    B, S, D = x.shape
    hd = D // H

    def ln(t, g, b):
        m = t.mean(-1, keepdims=True)
        v = ((t - m) ** 2).mean(-1, keepdims=True)
        return (t - m) / jnp.sqrt(v + LN_EPS) * g + b

    xn = ln(x, p["ln_g"], p["ln_b"])
    key = xn @ p["wk"].T + p["bk"]
    val = xn @ p["wv"].T + p["bv"]
    pe = build_2d_sin_encoding(N, P, D)
    q = jnp.broadcast_to(pe[None], (B, N, P, D)).reshape(B * N, P, D)
    ek = jnp.broadcast_to(key[:, None], (B, N, S, D)).reshape(B * N, S, D)
    ev = jnp.broadcast_to(val[:, None], (B, N, S, D)).reshape(B * N, S, D)
    qp = q @ p["wq_a"].T + p["bq_a"]
    kp = ek @ p["wk_a"].T + p["bk_a"]
    vp = ev @ p["wv_a"].T + p["bv_a"]

    def split(t, L):
        return t.reshape(B * N, L, H, hd).transpose(0, 2, 1, 3)

    qh, kh, vh = split(qp, P), split(kp, S), split(vp, S)
    s = jnp.einsum("bhqd,bhkd->bhqk", qh, kh) / math.sqrt(hd)
    a = jax.nn.softmax(s, axis=-1)
    o = jnp.einsum("bhqk,bhkd->bhqd", a, vh).transpose(0, 2, 1, 3).reshape(B * N, P, D)
    o = o @ p["wo_a"].T + p["bo_a"]
    o = o @ p["w_out"].T + p["b_out"]
    y = ln(o + q, p["on_g"], p["on_b"])
    return y.reshape(B, N, P, D)


# ----------------------------------------------------------------------------
# Deterministic parameter init (PyTorch Linear layout: W is [out, in]).
# ----------------------------------------------------------------------------
def init_params(key, D):
    ks = jax.random.split(key, 14)

    def w(k):
        return jax.random.normal(k, (D, D), jnp.float32) * 0.05

    def b(k):
        return jax.random.normal(k, (1, D), jnp.float32) * 0.05

    return dict(
        ln_g=jnp.ones((1, D), jnp.float32), ln_b=jnp.zeros((1, D), jnp.float32),
        wk=w(ks[0]), bk=b(ks[1]),
        wv=w(ks[2]), bv=b(ks[3]),
        wq_a=w(ks[4]), bq_a=b(ks[5]),
        wk_a=w(ks[6]), bk_a=b(ks[7]),
        wv_a=w(ks[8]), bv_a=b(ks[9]),
        wo_a=w(ks[10]), bo_a=b(ks[11]),
        w_out=w(ks[12]), b_out=b(ks[13]),
        on_g=jnp.ones((1, D), jnp.float32), on_b=jnp.zeros((1, D), jnp.float32),
    )


if __name__ == "__main__":
    B, S, D = 2, 8, 32          # batch, seq_len, embedding_dim
    N, P, H = 4, 8, 4           # num_nodes, par_length, num_heads

    root = jax.random.PRNGKey(0)
    kx, kp = jax.random.split(root)
    x = jax.random.normal(kx, (B, S, D), jnp.float32)
    params = init_params(kp, D)

    ref = reference(x, params, N, P, H)

    # Auto-selected path (single program on single-TC v5e/v6e, grid=(B,) elsewhere).
    fwd = jax.jit(functools.partial(fission_forward, num_nodes=N,
                                    par_length=P, num_heads=H))
    out = jax.block_until_ready(fwd(x, params))
    assert out.shape == (B, N, P, D)
    np.testing.assert_allclose(np.asarray(out), np.asarray(ref), atol=2e-4, rtol=2e-4)

    # Validate BOTH explicit batching layouts so either generation path is known-good.
    for bpp in (1, B):
        f = jax.jit(functools.partial(fission_forward, num_nodes=N, par_length=P,
                                      num_heads=H, batches_per_program=bpp))
        o = jax.block_until_ready(f(x, params))
        np.testing.assert_allclose(np.asarray(o), np.asarray(ref), atol=2e-4, rtol=2e-4)

    print("KERNEL_OK")
</pallas_src>

<mosaic_0001>
module attributes {stable_mosaic.version = 11 : i64} {
  func.func @fission_kernel(%arg0: i32, %arg1: memref<8x32xf32, #tpu.memory_space<vmem>>, %arg2: memref<264x128xf32, #tpu.memory_space<vmem>>, %arg3: memref<1x8x128xf32, #tpu.memory_space<vmem>>) attributes {dimension_semantics = [#tpu.dimension_semantics<parallel>], iteration_bounds = array<i64: 2>, scalar_prefetch = 0 : i64, scratch_operands = 0 : i64, tpu.core_type = #tpu.core_type<tc>, window_params = [{transform_indices = @transform_0, window_bounds = array<i64: 8, 32>}, {pipeline_mode = #tpu.pipeline_mode<synchronous>, transform_indices = @transform_1, window_bounds = array<i64: 264, 128>}, {transform_indices = @transform_2, window_bounds = array<i64: 1, 8, 128>}]} {
    %c0 = arith.constant 0 : index
    %c0_0 = arith.constant 0 : index
    %0 = vector.load %arg2[%c0, %c0_0] : memref<264x128xf32, #tpu.memory_space<vmem>>, vector<32x32xf32>
    %c32 = arith.constant 32 : index
    %c0_1 = arith.constant 0 : index
    %1 = vector.load %arg2[%c32, %c0_1] : memref<264x128xf32, #tpu.memory_space<vmem>>, vector<32x32xf32>
    %c64 = arith.constant 64 : index
    %c0_2 = arith.constant 0 : index
    %2 = vector.load %arg2[%c64, %c0_2] : memref<264x128xf32, #tpu.memory_space<vmem>>, vector<64x32xf32>
    %c128 = arith.constant 128 : index
    %c0_3 = arith.constant 0 : index
    %3 = vector.load %arg2[%c128, %c0_3] : memref<264x128xf32, #tpu.memory_space<vmem>>, vector<1x32xf32>
    %c129 = arith.constant 129 : index
    %c0_4 = arith.constant 0 : index
    %4 = vector.load %arg2[%c129, %c0_4] : memref<264x128xf32, #tpu.memory_space<vmem>>, vector<1x32xf32>
    %c130 = arith.constant 130 : index
    %c0_5 = arith.constant 0 : index
    %5 = vector.load %arg2[%c130, %c0_5] : memref<264x128xf32, #tpu.memory_space<vmem>>, vector<1x32xf32>
    %c131 = arith.constant 131 : index
    %c0_6 = arith.constant 0 : index
    %6 = vector.load %arg2[%c131, %c0_6] : memref<264x128xf32, #tpu.memory_space<vmem>>, vector<1x32xf32>
    %c132 = arith.constant 132 : index
    %c0_7 = arith.constant 0 : index
    %7 = vector.load %arg2[%c132, %c0_7] : memref<264x128xf32, #tpu.memory_space<vmem>>, vector<1x64xf32>
    %c136 = arith.constant 136 : index
    %c0_8 = arith.constant 0 : index
    %8 = vector.load %arg2[%c136, %c0_8] : memref<264x128xf32, #tpu.memory_space<vmem>>, vector<32x32xf32>
    %c168 = arith.constant 168 : index
    %c0_9 = arith.constant 0 : index
    %9 = vector.load %arg2[%c168, %c0_9] : memref<264x128xf32, #tpu.memory_space<vmem>>, vector<32x32xf32>
    %c200 = arith.constant 200 : index
    %c0_10 = arith.constant 0 : index
    %10 = vector.load %arg2[%c200, %c0_10] : memref<264x128xf32, #tpu.memory_space<vmem>>, vector<32x32xf32>
    %c232 = arith.constant 232 : index
    %c0_11 = arith.constant 0 : index
    %11 = vector.load %arg2[%c232, %c0_11] : memref<264x128xf32, #tpu.memory_space<vmem>>, vector<32x32xf32>
    %c0_12 = arith.constant 0 : index
    %c0_13 = arith.constant 0 : index
    %12 = vector.load %arg1[%c0_12, %c0_13] : memref<8x32xf32, #tpu.memory_space<vmem>>, vector<8x32xf32>
    %cst = arith.constant dense<0.000000e+00> : vector<8xf32>
    %13 = vector.multi_reduction <add>, %12, %cst [1] : vector<8x32xf32> to vector<8xf32>
    %14 = vector.shape_cast %13 : vector<8xf32> to vector<8x1xf32>
    %cst_14 = arith.constant 3.200000e+01 : f32
    %15 = vector.broadcast %cst_14 : f32 to vector<8x1xf32>
    %16 = arith.divf %14, %15 : vector<8x1xf32>
    %17 = vector.broadcast %16 : vector<8x1xf32> to vector<8x32xf32>
    %18 = arith.subf %12, %17 : vector<8x32xf32>
    %19 = arith.mulf %18, %18 : vector<8x32xf32>
    %cst_15 = arith.constant dense<0.000000e+00> : vector<8xf32>
    %20 = vector.multi_reduction <add>, %19, %cst_15 [1] : vector<8x32xf32> to vector<8xf32>
    %21 = vector.shape_cast %20 : vector<8xf32> to vector<8x1xf32>
    %cst_16 = arith.constant 3.200000e+01 : f32
    %22 = vector.broadcast %cst_16 : f32 to vector<8x1xf32>
    %23 = arith.divf %21, %22 : vector<8x1xf32>
    %24 = vector.broadcast %16 : vector<8x1xf32> to vector<8x32xf32>
    %25 = arith.subf %12, %24 : vector<8x32xf32>
    %cst_17 = arith.constant 9.99999974E-6 : f32
    %26 = vector.broadcast %cst_17 : f32 to vector<8x1xf32>
    %27 = arith.addf %23, %26 : vector<8x1xf32>
    %28 = math.rsqrt %27 : vector<8x1xf32>
    %29 = vector.broadcast %28 : vector<8x1xf32> to vector<8x32xf32>
    %30 = arith.mulf %25, %29 : vector<8x32xf32>
    %31 = vector.broadcast %3 : vector<1x32xf32> to vector<8x32xf32>
    %32 = arith.mulf %30, %31 : vector<8x32xf32>
    %33 = vector.broadcast %4 : vector<1x32xf32> to vector<8x32xf32>
    %34 = arith.addf %32, %33 : vector<8x32xf32>
    %cst_18 = arith.constant dense<0.000000e+00> : vector<8x64xf32>
    %35 = tpu.matmul %34, %2, %cst_18 {dimension_numbers = #tpu.dot_dimension_numbers<[1], [1], [0], [0], [0, 0, 1, 0], [], []>} : vector<8x32xf32>, vector<64x32xf32>, vector<8x64xf32> -> vector<8x64xf32>
    %36 = vector.broadcast %7 : vector<1x64xf32> to vector<8x64xf32>
    %37 = arith.addf %35, %36 : vector<8x64xf32>
    %38 = vector.extract_strided_slice %37 {offsets = [0, 0], sizes = [8, 32], strides = [1, 1]} : vector<8x64xf32> to vector<8x32xf32>
    %39 = vector.extract_strided_slice %37 {offsets = [0, 32], sizes = [8, 32], strides = [1, 1]} : vector<8x64xf32> to vector<8x32xf32>
    %40 = tpu.concatenate %38, %38, %38, %38 in 0 : vector<8x32xf32>, vector<8x32xf32>, vector<8x32xf32>, vector<8x32xf32> -> vector<32x32xf32>
    %41 = tpu.concatenate %39, %39, %39, %39 in 0 : vector<8x32xf32>, vector<8x32xf32>, vector<8x32xf32>, vector<8x32xf32> -> vector<32x32xf32>
    %42 = arith.mulf %40, %1 : vector<32x32xf32>
    %cst_19 = arith.constant dense<0.000000e+00> : vector<32x32xf32>
    %43 = tpu.matmul %0, %42, %cst_19 {dimension_numbers = #tpu.dot_dimension_numbers<[1], [1], [0], [0], [0, 0, 1, 0], [], []>} : vector<32x32xf32>, vector<32x32xf32>, vector<32x32xf32> -> vector<32x32xf32>
    %cst_20 = arith.constant dense<0xFF800000> : vector<32xf32>
    %44 = vector.multi_reduction <maximumf>, %43, %cst_20 [1] : vector<32x32xf32> to vector<32xf32>
    %45 = vector.shape_cast %44 : vector<32xf32> to vector<32x1xf32>
    %46 = vector.broadcast %45 : vector<32x1xf32> to vector<32x32xf32>
    %47 = arith.subf %43, %46 : vector<32x32xf32>
    %48 = math.exp %47 : vector<32x32xf32>
    %cst_21 = arith.constant dense<0.000000e+00> : vector<32x32xf32>
    %49 = tpu.matmul %48, %10, %cst_21 {dimension_numbers = #tpu.dot_dimension_numbers<[1], [0], [0], [1], [0, 0, 1, 1], [], []>} : vector<32x32xf32>, vector<32x32xf32>, vector<32x32xf32> -> vector<32x32xf32>
    %50 = arith.divf %48, %49 : vector<32x32xf32>
    %51 = arith.mulf %41, %9 : vector<32x32xf32>
    %cst_22 = arith.constant dense<0.000000e+00> : vector<32x32xf32>
    %52 = tpu.matmul %50, %51, %cst_22 {dimension_numbers = #tpu.dot_dimension_numbers<[1], [0], [0], [1], [0, 0, 1, 1], [], []>} : vector<32x32xf32>, vector<32x32xf32>, vector<32x32xf32> -> vector<32x32xf32>
    %cst_23 = arith.constant dense<0.000000e+00> : vector<32x32xf32>
    %53 = tpu.matmul %52, %11, %cst_23 {dimension_numbers = #tpu.dot_dimension_numbers<[1], [0], [0], [1], [0, 0, 1, 1], [], []>} : vector<32x32xf32>, vector<32x32xf32>, vector<32x32xf32> -> vector<32x32xf32>
    %54 = arith.addf %53, %8 : vector<32x32xf32>
    %cst_24 = arith.constant dense<0.000000e+00> : vector<32xf32>
    %55 = vector.multi_reduction <add>, %54, %cst_24 [1] : vector<32x32xf32> to vector<32xf32>
    %56 = vector.shape_cast %55 : vector<32xf32> to vector<32x1xf32>
    %cst_25 = arith.constant 3.200000e+01 : f32
    %57 = vector.broadcast %cst_25 : f32 to vector<32x1xf32>
    %58 = arith.divf %56, %57 : vector<32x1xf32>
    %59 = vector.broadcast %58 : vector<32x1xf32> to vector<32x32xf32>
    %60 = arith.subf %54, %59 : vector<32x32xf32>
    %61 = arith.mulf %60, %60 : vector<32x32xf32>
    %cst_26 = arith.constant dense<0.000000e+00> : vector<32xf32>
    %62 = vector.multi_reduction <add>, %61, %cst_26 [1] : vector<32x32xf32> to vector<32xf32>
    %63 = vector.shape_cast %62 : vector<32xf32> to vector<32x1xf32>
    %cst_27 = arith.constant 3.200000e+01 : f32
    %64 = vector.broadcast %cst_27 : f32 to vector<32x1xf32>
    %65 = arith.divf %63, %64 : vector<32x1xf32>
    %66 = vector.broadcast %58 : vector<32x1xf32> to vector<32x32xf32>
    %67 = arith.subf %54, %66 : vector<32x32xf32>
    %cst_28 = arith.constant 9.99999974E-6 : f32
    %68 = vector.broadcast %cst_28 : f32 to vector<32x1xf32>
    %69 = arith.addf %65, %68 : vector<32x1xf32>
    %70 = math.rsqrt %69 : vector<32x1xf32>
    %71 = vector.broadcast %70 : vector<32x1xf32> to vector<32x32xf32>
    %72 = arith.mulf %67, %71 : vector<32x32xf32>
    %73 = vector.broadcast %5 : vector<1x32xf32> to vector<32x32xf32>
    %74 = arith.mulf %72, %73 : vector<32x32xf32>
    %75 = vector.broadcast %6 : vector<1x32xf32> to vector<32x32xf32>
    %76 = arith.addf %74, %75 : vector<32x32xf32>
    %77 = vector.extract_strided_slice %76 {offsets = [0, 0], sizes = [8, 32], strides = [1, 1]} : vector<32x32xf32> to vector<8x32xf32>
    %78 = vector.extract_strided_slice %76 {offsets = [8, 0], sizes = [8, 32], strides = [1, 1]} : vector<32x32xf32> to vector<8x32xf32>
    %79 = vector.extract_strided_slice %76 {offsets = [16, 0], sizes = [8, 32], strides = [1, 1]} : vector<32x32xf32> to vector<8x32xf32>
    %80 = vector.extract_strided_slice %76 {offsets = [24, 0], sizes = [8, 32], strides = [1, 1]} : vector<32x32xf32> to vector<8x32xf32>
    %81 = tpu.concatenate %77, %78, %79, %80 in 1 : vector<8x32xf32>, vector<8x32xf32>, vector<8x32xf32>, vector<8x32xf32> -> vector<8x128xf32>
    %c0_29 = arith.constant 0 : index
    %c0_30 = arith.constant 0 : index
    %c0_31 = arith.constant 0 : index
    %82 = vector.load %arg3[%c0_29, %c0_30, %c0_31] : memref<1x8x128xf32, #tpu.memory_space<vmem>>, vector<1x8x128xf32>
    %83 = vector.shape_cast %82 : vector<1x8x128xf32> to vector<8x128xf32>
    %84 = vector.shape_cast %81 : vector<8x128xf32> to vector<1x8x128xf32>
    tpu.vector_store %arg3[%c0_29, %c0_30, %c0_31], %84 {strides = array<i32>} : memref<1x8x128xf32, #tpu.memory_space<vmem>>, vector<1x8x128xf32>,
    return
  }
  func.func @transform_0(%arg0: i32) -> (i32, i32) {
    %c0_i32 = arith.constant 0 : i32
    %c0_i32_0 = arith.constant 0 : i32
    return %arg0, %c0_i32 : i32, i32
  }
  func.func @transform_1(%arg0: i32) -> (i32, i32) {
    %c0_i32 = arith.constant 0 : i32
    %c0_i32_0 = arith.constant 0 : i32
    %c0_i32_1 = arith.constant 0 : i32
    return %c0_i32, %c0_i32_0 : i32, i32
  }
  func.func @transform_2(%arg0: i32) -> (i32, i32, i32) {
    %c0_i32 = arith.constant 0 : i32
    %c0_i32_0 = arith.constant 0 : i32
    %c0_i32_1 = arith.constant 0 : i32
    return %arg0, %c0_i32, %c0_i32_0 : i32, i32, i32
  }
}

</mosaic_0001>

<bundles_post_ra>
// kernel: fission_forward.1
= control target key start
LH: loop header
LB: loop body
LE: loop exit
PB: predicated region body
PF: predicated region fallthrough
CT: control target
= control target key end

     0   :  { %s1148_s9 = smov 0   ;;  %s1351_s0 = inlined_call_operand.vmem [shape: f32[16,32], index: 0, kind: input, shape index: {}]   ;;  %s1352_s1 = inlined_call_operand.vmem [shape: f32[264,128], index: 1, kind: input, shape index: {}]   ;;  %s1353_s2 = inlined_call_operand.vmem [shape: f32[2,8,128], index: 2, kind: output, shape index: {}]  }
   0x1 LB: > { %s914_s10 = sadd.s32 4294967295, %s1126_s9   ;;  %p918_p0 = scmp.ge.s32.totalorder %s1126_s9, 1  ;;  %s1126_s9 = sphi %s1148_s9, %s12_s9  }
   0x2   : > { %p111_p1 = scmp.lt.s32.totalorder %s1126_s9, 3 }
   0x4   : > { %p112_p2 = pnand %p918_p0, %p111_p1 }
   0x5   : > { %p131_p3 = scmp.lt.s32.totalorder (!%p112_p2), %s914_s10, 1  ;;  %s1130_s8 = smov (!%p112_p2), 32  }
   0x6   : > { %115 = sbr.rel (%p112_p2) target bundleno = 1930 (0x78a), region = 28  ;;  %s1131_s20 = smov (!%p112_p2), 96  }
   0x7   : > { %s1132_s17 = smov (!%p112_p2), 64  }
   0xb   : > { %s1355_s10 = smov (!%p131_p3, %s914_s10), 1  ;;  %vm177_vm0 = vcmask 261120   ;;  %v154_v2 = vld [vmem:[%s1352_s1 + $0x78] sm:$0xff]  ;;  %v1128_v3 = vmov 0.0   ;;  %v153_v4 = vld [vmem:[%s1352_s1 + $0x70] sm:$0xff]  ;;  %v152_v10 = vld [vmem:[%s1352_s1 + $0x68] sm:$0xff] }
   0xc   : > { %s919_s11 = sshll.u32 %s1355_s10, 3  ;;  %998 = vmatprep.subr.mxu0 %v1128_v3  ;;  %v151_v11 = vld [vmem:[%s1352_s1 + $0x60] sm:$0xff]  ;;  %vm1129_vm1 = vmmov 0   ;;  %v150_v12 = vld [vmem:[%s1352_s1 + $0x58] sm:$0xff]  ;;  %v149_v13 = vld [vmem:[%s1352_s1 + $0x50] sm:$0xff]  ;;  %vm856_vm2 = vcmask 523264  }
   0xd   : > { %s134_s14 = scalar_lea.vmem %s1351_s0, %s919_s11  ;;  %999 = vmatpush3.xpose.msk.msra.mxu0 %vm177_vm0, %v154_v2  ;;  %1014 = vmatprep.mubr.msk.f32.mxu0 %vm1129_vm1, %v1128_v3  ;;  %v148_v14 = vld [vmem:[%s1352_s1 + $0x48] sm:$0xff]  ;;  %v147_v15 = vld [vmem:[%s1352_s1 + $0x40] sm:$0xff]  ;;  %v146_v28 = vld [vmem:[%s1352_s1 + $0x38] sm:$0xff]  ;;  %vm858_vm3 = vcmask 785408   ;;  %s138_s19 = scalar_lea.vmem %s1353_s2, %s919_s11 }
   0xe   : > { %v176_v0 = vld [vmem:[%s134_s14] sm:$0xff]  ;;  %1000 = vmatprep.subr.mxu0 %v1128_v3  ;;  %v145_v31 = vld [vmem:[%s1352_s1 + $0x30] sm:$0xff]  ;;  %v144_v34 = vld [vmem:[%s1352_s1 + $0x28] sm:$0xff] }
   0xf   : > { %v178_v1 = vsel %vm177_vm0, %v176_v0, 0.0  ;;  %v921_v20 = vld [vmem:[%s1352_s1 + $0x80] ss:$0 sm:$0xff]  ;;  %v922_v22 = vld [vmem:[%s1352_s1 + $0x81] ss:$0 sm:$0xff]  ;;  %v140_v38 = vld [vmem:[%s1352_s1 + $0x8] sm:$0xff] }
  0x10   : > { %179 = vadd.xlane.f32.xlu0 %v178_v1  ;;  %v139_v25 = vld [vmem:[%s1352_s1] sm:$0xff]  ;;  %v141_v39 = vld [vmem:[%s1352_s1 + $0x10] sm:$0xff]  ;;  %v142_v40 = vld [vmem:[%s1352_s1 + $0x18] sm:$0xff] }
  0x11   : > { %1001 = vmatpush3.xpose.msk.msra.mxu0 %vm177_vm0, %v153_v4  ;;  %1025 = vmatprep.mubr.msk.f32.mxu1 %vm177_vm0, %v139_v25  ;;  %v923_v26 = vld [vmem:[%s1352_s1 + $0x84] ss:$0 sm:$0xff]  ;;  %v166_v49 = vld [vmem:[%s1352_s1 + $0xb8] sm:$0xff]  ;;  %v165_v53 = vld [vmem:[%s1352_s1 + $0xb0] sm:$0xff] }
  0x12   : > { %1002 = vmatprep.subr.mxu0 %v1128_v3  ;;  %v143_v36 = vld [vmem:[%s1352_s1 + $0x20] sm:$0xff]  ;;  %v170_v52 = vld [vmem:[%s1352_s1 + $0xd8] sm:$0xff]  ;;  %v169_v54 = vld [vmem:[%s1352_s1 + $0xd0] sm:$0xff] }
  0x13   : > { %v171_v50 = vld [vmem:[%s1352_s1 + $0xe0] sm:$0xff]  ;;  %v168_v55 = vld [vmem:[%s1352_s1 + $0xc8] sm:$0xff] }
  0x14   : > { %v167_v51 = vld [vmem:[%s1352_s1 + $0xc0] sm:$0xff]  ;;  %v164_v56 = vld [vmem:[%s1352_s1 + $0xa8] sm:$0xff] }
  0x15   : > { %1003 = vmatpush3.xpose.msk.msra.mxu0 %vm177_vm0, %v152_v10 }
  0x16   : > { %1004 = vmatprep.subr.mxu0 %v1128_v3 }
  0x19   : > { %1005 = vmatpush3.xpose.msk.msra.mxu0 %vm177_vm0, %v151_v11 }
  0x1a   : > { %1006 = vmatprep.subr.mxu0 %v1128_v3 }
  0x1d   : > { %1007 = vmatpush3.xpose.msk.msra.mxu0 %vm177_vm0, %v150_v12 }
  0x1e   : > { %1008 = vmatprep.subr.mxu0 %v1128_v3 }
  0x21   : > { %1009 = vmatpush3.xpose.msk.msra.mxu0 %vm177_vm0, %v149_v13 }
  0x22   : > { %1010 = vmatprep.subr.mxu0 %v1128_v3 }
  0x25   : > { %1011 = vmatpush3.xpose.msk.msra.mxu0 %vm177_vm0, %v148_v14 }
  0x26   : > { %1012 = vmatprep.subr.mxu0 %v1128_v3 }
  0x29   : > { %1013 = vmatpush3.xpose.msk.msra.mxu0 %vm177_vm0, %v147_v15 }
  0x99   : > { %v180_v5 = vpop.xlane.xlu0 %179 }
  0x9a   : > { %v182_v6 = vmul.f32 0.03125, %v180_v5 }
  0x9c   : > { %v183_v7 = vsub.f32 %v176_v0, %v182_v6 }
  0x9e   : > { %v184_v8 = vmul.f32 %v183_v7, %v183_v7 }
  0xa0   : > { %v185_v9 = vsel %vm177_vm0, %v184_v8, 0.0 }
  0xa1   : > { %186 = vadd.xlane.f32.xlu0 %v185_v9 }
 0x12a   : > { %v187_v16 = vpop.xlane.xlu0 %186 }
 0x12b   : > { %v188_v17 = vmul.f32 0.03125, %v187_v16 }
 0x12d   : > { %v189_v18 = vadd.f32 1e-05, %v188_v17  ;;  %v175_v17 = vld [vmem:[%s1352_s1 + $0x100] sm:$0xff] }
 0x12e   : > { %1059 = vmatprep.subr.mxu0 %v175_v17 }
 0x12f   : > { %1094 = vrsqrt.f32 %v189_v18  ;;  %v174_v18 = vld [vmem:[%s1352_s1 + $0xf8] sm:$0xff] }
 0x13c   : > { %v1095_v19 = vpop.eup %1094 }
 0x13d   : > { %v191_v21 = vmul.f32 %v1095_v19, %v183_v7 }
 0x13f   : > { %v196_v23 = vmul.f32 %v921_v20, %v191_v21 }
 0x141   : > { %v201_v24 = vadd.f32 %v922_v22, %v196_v23 }
 0x143   : > { %1015 = vmatmul.mubr.msk.f32.vlgmr.msra.gmra.mxu0 %vm177_vm0, %v201_v24 }
 0x144   : > { %1060 = vmatpush3.msra.mxu0 %v175_v17 }
 0x145   : > { %1061 = vmatprep.subr.mxu0 %v174_v18 }
 0x146   : > { %1062 = vmatpush3.msra.mxu0 %v174_v18 }
 0x203   : > { %v299_v27 = vpop.f32.mrf.mxu0 }
 0x204   : > { %v1215_v29 = vadd.f32 %v923_v26, %v299_v27 }
 0x205   : > { %v1016_v30 = vpop.f32.mrf.mxu0 }
 0x206   : > { %v306_v32 = vmul.f32 %v1215_v29, %v146_v28  ;;  %v305_v33 = vmul.f32 %v1215_v29, %v145_v31  ;;  %v304_v35 = vmul.f32 %v1215_v29, %v144_v34  ;;  %v303_v37 = vmul.f32 %v1215_v29, %v143_v36  ;;  %v172_v36 = vld [vmem:[%s1352_s1 + $0xe8] sm:$0xff] }
 0x208   : > { %1017 = vmatprep.subr.msk.mxu1 %vm177_vm0, %v306_v32 }
 0x209   : > { %1018 = vmatpush3.xpose.msk.msra.mxu1 %vm177_vm0, %v306_v32 }
 0x20a   : > { %1019 = vmatprep.subr.msk.mxu1 %vm177_vm0, %v305_v33 }
 0x20d   : > { %1020 = vmatpush3.xpose.msk.msra.mxu1 %vm177_vm0, %v305_v33 }
 0x20e   : > { %1021 = vmatprep.subr.msk.mxu1 %vm177_vm0, %v304_v35 }
 0x211   : > { %1022 = vmatpush3.xpose.msk.msra.mxu1 %vm177_vm0, %v304_v35  ;;  %v173_v35 = vld [vmem:[%s1352_s1 + $0xf0] sm:$0xff] }
 0x212   : > { %1023 = vmatprep.subr.msk.mxu1 %vm177_vm0, %v303_v37  ;;  %1063 = vmatprep.subr.mxu0 %v173_v35 }
 0x213   : > { %1064 = vmatpush3.msra.mxu0 %v173_v35 }
 0x214   : > { %1065 = vmatprep.subr.mxu0 %v172_v36 }
 0x215   : > { %1024 = vmatpush3.xpose.msk.msra.mxu1 %vm177_vm0, %v303_v37  ;;  %1066 = vmatpush3.msra.mxu0 %v172_v36 }
 0x216   : > { %1031 = vmatprep.subr.mxu1 %v171_v50 }
 0x218   : > { %1026 = vmatmul.mubr.msk.f32.vlgmr.msra.gmra.mxu1 %vm177_vm0, %v140_v38 }
 0x219   : > { %1028 = vmatprep.mubr.msk.f32.mxu1 %vm177_vm0, %v141_v39  ;;  %1032 = vmatpush3.msra.mxu1 %v171_v50 }
 0x21a   : > { %1033 = vmatprep.subr.mxu1 %v170_v52 }
 0x21b   : > { %1034 = vmatpush3.msra.mxu1 %v170_v52 }
 0x21c   : > { %1029 = vmatmul.mubr.msk.f32.gmra.mxu1 %vm177_vm0, %v142_v40  ;;  %1035 = vmatprep.subr.mxu1 %v169_v54 }
 0x21d   : > { %1036 = vmatpush3.msra.mxu1 %v169_v54 }
 0x21e   : > { %1037 = vmatprep.subr.mxu1 %v168_v55 }
 0x21f   : > { %1038 = vmatpush3.msra.mxu1 %v168_v55 }
 0x2d8   : > { %v1027_v41 = vpop.f32.mrf.mxu1 }
 0x2d9   : > { %v419_v46 = vsel %vm177_vm0, %v1027_v41, -inf }
 0x2da   : > { %v397_v42 = vpop.f32.mrf.mxu1 }
 0x2db   : > { %v416_v43 = vsel %vm177_vm0, %v397_v42, -inf }
 0x2dc   : > { %417 = vmax.xlane.f32.xlu1 %v416_v43  ;;  %v1030_v44 = vpop.f32.mrf.mxu1 }
 0x2dd   : > { %v425_v48 = vsel %vm177_vm0, %v1030_v44, -inf }
 0x2de   : > { %v407_v45 = vpop.f32.mrf.mxu1 }
 0x2df   : > { %v422_v47 = vsel %vm177_vm0, %v407_v45, -inf }
 0x2e0   : > { %420 = vmax.xlane.f32.xlu1 %v419_v46  ;;  %423 = vmax.xlane.f32.xlu0 %v422_v47  ;;  %v160_v47 = vld [vmem:[%s1352_s1 + $0x88] sm:$0xff] }
 0x2e4   : > { %426 = vmax.xlane.f32.xlu1 %v425_v48 }
 0x2f5   : > { %553 = vrot.lane.b32.xlu1 %v166_v49, %s1130_s8  ;;  %v162_v49 = vld [vmem:[%s1352_s1 + $0x98] sm:$0xff] }
 0x2f6   : > { %555 = vrot.lane.b32.xlu0 %v167_v51, %s1130_s8 }
 0x2f9   : > { %551 = vrot.lane.b32.xlu1 %v165_v53, %s1130_s8 }
 0x2fd   : > { %549 = vrot.lane.b32.xlu1 %v164_v56, %s1130_s8 }
 0x365   : > { %v418_v57 = vpop.xlane.xlu1 %417 }
 0x366   : > { %v428_v58 = vsub.f32 %v397_v42, %v418_v57 }
 0x368   : > { %v432_v59 = vmul.f32 1.442695, %v428_v58 }
 0x369   : > { %v421_v60 = vpop.xlane.xlu1 %420  ;;  %v424_v61 = vpop.xlane.xlu0 %423 }
 0x36a   : > { %1096 = vpow2.f32 %v432_v59  ;;  %v429_v62 = vsub.f32 %v1027_v41, %v421_v60  ;;  %v430_v63 = vsub.f32 %v407_v45, %v424_v61  ;;  %v161_v41 = vld [vmem:[%s1352_s1 + $0x90] sm:$0xff] }
 0x36c   : > { %v434_v0 = vmul.f32 1.442695, %v429_v62  ;;  %v436_v1 = vmul.f32 1.442695, %v430_v63 }
 0x36d   : > { %v427_v2 = vpop.xlane.xlu1 %426  ;;  %v556_v3 = vpop.permute.xlu0 %555 }
 0x36e   : > { %1098 = vpow2.f32 %v434_v0  ;;  %v431_v4 = vsub.f32 %v1030_v44, %v427_v2  ;;  %v564_v5 = vmul.f32 %v556_v3, %v1215_v29  ;;  %v163_v44 = vld [vmem:[%s1352_s1 + $0xa0] sm:$0xff] }
 0x36f   : > { %1100 = vpow2.f32 %v436_v1 }
 0x370   : > { %v438_v6 = vmul.f32 1.442695, %v431_v4  ;;  %575 = vrot.lane.b32.xlu0 %v564_v5, %s1131_s20 }
 0x371   : > { %v554_v7 = vpop.permute.xlu1 %553 }
 0x372   : > { %1102 = vpow2.f32 %v438_v6  ;;  %v563_v8 = vmul.f32 %v554_v7, %v1215_v29 }
 0x374   : > { %573 = vrot.lane.b32.xlu1 %v563_v8, %s1131_s20 }
 0x375   : > { %v552_v9 = vpop.permute.xlu1 %551 }
 0x376   : > { %v562_v10 = vmul.f32 %v552_v9, %v1215_v29 }
 0x377   : > { %v1097_v11 = vpop.eup %1096 }
 0x378   : > { %1039 = vmatprep.mubr.msk.f32.mxu1 %vm177_vm0, %v1097_v11  ;;  %571 = vrot.lane.b32.xlu0 %v562_v10, %s1131_s20 }
 0x379   : > { %v550_v12 = vpop.permute.xlu1 %549 }
 0x37a   : > { %v561_v13 = vmul.f32 %v550_v12, %v1215_v29 }
 0x37b   : > { %v1099_v14 = vpop.eup %1098 }
 0x37c   : > { %v1101_v15 = vpop.eup %1100  ;;  %1040 = vmatmul.mubr.msk.f32.vlgmr.msra.gmra.mxu1 %vm177_vm0, %v1099_v14  ;;  %569 = vrot.lane.b32.xlu1 %v561_v13, %s1131_s20 }
 0x37d   : > { %1042 = vmatprep.mubr.msk.f32.mxu1 %vm177_vm0, %v1101_v15 }
 0x37f   : > { %v1103_v16 = vpop.eup %1102 }
 0x380   : > { %1043 = vmatmul.mubr.msk.f32.gmra.mxu1 %vm177_vm0, %v1103_v16 }
 0x3e2   : > { %v576_v19 = vpop.permute.xlu0 %575 }
 0x3e3   : > { %1045 = vmatprep.subr.mxu1 %v576_v19 }
 0x3e4   : > { %1046 = vmatpush3.msra.mxu1 %v576_v19 }
 0x3e6   : > { %v574_v20 = vpop.permute.xlu1 %573 }
 0x3e7   : > { %1047 = vmatprep.subr.mxu1 %v574_v20 }
 0x3e8   : > { %1048 = vmatpush3.msra.mxu1 %v574_v20 }
 0x3ea   : > { %v572_v21 = vpop.permute.xlu0 %571 }
 0x3eb   : > { %1049 = vmatprep.subr.mxu1 %v572_v21 }
 0x3ec   : > { %1050 = vmatpush3.msra.mxu1 %v572_v21 }
 0x3ee   : > { %v570_v22 = vpop.permute.xlu1 %569 }
 0x3ef   : > { %1051 = vmatprep.subr.mxu1 %v570_v22 }
 0x3f0   : > { %1052 = vmatpush3.msra.mxu1 %v570_v22 }
 0x3f1   : > { %1073 = vmatprep.subr.mxu1 %v175_v17 }
 0x43c   : > { %v1041_v23 = vpop.f32.mrf.mxu1 }
 0x43d   : > { %1104 = vrcp.f32 %v1041_v23 }
 0x43e   : > { %v518_v24 = vpop.f32.mrf.mxu1 }
 0x43f   : > { %1106 = vrcp.f32 %v518_v24 }
 0x440   : > { %v1044_v25 = vpop.f32.mrf.mxu1 }
 0x441   : > { %1108 = vrcp.f32 %v1044_v25 }
 0x442   : > { %v528_v26 = vpop.f32.mrf.mxu1 }
 0x443   : > { %1110 = vrcp.f32 %v528_v26  ;;  %v953_v26 = vld [vmem:[%s1352_s1 + $0x82] ss:$0 sm:$0xff] }
 0x44a   : > { %v1105_v27 = vpop.eup %1104 }
 0x44b   : > { %v540_v30 = vmul.f32 %v1105_v27, %v1099_v14 }
 0x44c   : > { %v1107_v28 = vpop.eup %1106 }
 0x44d   : > { %v538_v29 = vmul.f32 %v1107_v28, %v1097_v11  ;;  %v954_v28 = vld [vmem:[%s1352_s1 + $0x83] ss:$0 sm:$0xff] }
 0x44e   : > { %v1109_v31 = vpop.eup %1108 }
 0x44f   : > { %1053 = vmatprep.mubr.msk.f32.mxu1 %vm177_vm0, %v538_v29  ;;  %v544_v34 = vmul.f32 %v1109_v31, %v1103_v16 }
 0x450   : > { %v1111_v32 = vpop.eup %1110  ;;  %1054 = vmatmul.mubr.msk.f32.vlgmr.msra.gmra.mxu1 %vm177_vm0, %v540_v30 }
 0x451   : > { %v542_v33 = vmul.f32 %v1111_v32, %v1101_v15  ;;  %1077 = vmatpush3.msra.mxu1 %v175_v17 }
 0x452   : > { %1074 = vmatprep.subr.mxu1 %v174_v18 }
 0x453   : > { %1056 = vmatprep.mubr.msk.f32.mxu1 %vm177_vm0, %v542_v33  ;;  %1078 = vmatpush3.msra.mxu1 %v174_v18 }
 0x454   : > { %1057 = vmatmul.mubr.msk.f32.gmra.mxu1 %vm177_vm0, %v544_v34  ;;  %1075 = vmatprep.subr.mxu1 %v173_v35 }
 0x455   : > { %1079 = vmatpush3.msra.mxu1 %v173_v35 }
 0x456   : > { %1076 = vmatprep.subr.mxu1 %v172_v36 }
 0x457   : > { %1080 = vmatpush3.msra.mxu1 %v172_v36 }
 0x510   : > { %v1055_v37 = vpop.f32.mrf.mxu1 }
 0x512   : > { %v659_v38 = vpop.f32.mrf.mxu1 }
 0x513   : > { %1067 = vmatprep.mubr.msk.f32.mxu0 %vm177_vm0, %v659_v38 }
 0x514   : > { %v1058_v39 = vpop.f32.mrf.mxu1  ;;  %1068 = vmatmul.mubr.msk.f32.vlgmr.msra.gmra.mxu0 %vm177_vm0, %v1055_v37 }
 0x516   : > { %v669_v40 = vpop.f32.mrf.mxu1 }
 0x517   : > { %1070 = vmatprep.mubr.msk.f32.mxu1 %vm177_vm0, %v669_v40 }
 0x518   : > { %1071 = vmatmul.mubr.msk.f32.vlgmr.msra.gmra.mxu1 %vm177_vm0, %v1058_v39 }
 0x5d4   : > { %v1069_v42 = vpop.f32.mrf.mxu0 }
 0x5d5   : > { %v762_v43 = vadd.f32 %v1069_v42, %v161_v41 }
 0x5d6   : > { %v756_v46 = vpop.f32.mrf.mxu0 }
 0x5d7   : > { %v778_v45 = vsel %vm177_vm0, %v762_v43, 0.0  ;;  %v757_v52 = vadd.f32 %v756_v46, %v160_v47 }
 0x5d8   : > { %v1072_v48 = vpop.f32.mrf.mxu1  ;;  %779 = vadd.xlane.f32.xlu0 %v778_v45 }
 0x5d9   : > { %v772_v50 = vadd.f32 %v1072_v48, %v163_v44  ;;  %v775_v56 = vsel %vm177_vm0, %v757_v52, 0.0 }
 0x5da   : > { %v766_v51 = vpop.f32.mrf.mxu1 }
 0x5db   : > { %v767_v53 = vadd.f32 %v766_v51, %v162_v49  ;;  %v784_v54 = vsel %vm177_vm0, %v772_v50, 0.0 }
 0x5dc   : > { %785 = vadd.xlane.f32.xlu0 %v784_v54 }
 0x5dd   : > { %v781_v55 = vsel %vm177_vm0, %v767_v53, 0.0 }
 0x5de   : > { %782 = vadd.xlane.f32.xlu1 %v781_v55 }
 0x5e0   : > { %776 = vadd.xlane.f32.xlu0 %v775_v56 }
 0x661   : > { %v780_v57 = vpop.xlane.xlu0 %779 }
 0x662   : > { %v788_v58 = vmul.f32 0.03125, %v780_v57 }
 0x664   : > { %v792_v59 = vsub.f32 %v762_v43, %v788_v58 }
 0x665   : > { %v786_v60 = vpop.xlane.xlu0 %785 }
 0x666   : > { %v790_v61 = vmul.f32 0.03125, %v786_v60  ;;  %v796_v62 = vmul.f32 %v792_v59, %v792_v59 }
 0x667   : > { %v783_v63 = vpop.xlane.xlu1 %782 }
 0x668   : > { %v794_v0 = vsub.f32 %v772_v50, %v790_v61  ;;  %v789_v1 = vmul.f32 0.03125, %v783_v63  ;;  %v802_v2 = vsel %vm177_vm0, %v796_v62, 0.0 }
 0x669   : > { %803 = vadd.xlane.f32.xlu0 %v802_v2  ;;  %v777_v3 = vpop.xlane.xlu0 %776 }
 0x66a   : > { %v793_v4 = vsub.f32 %v767_v53, %v789_v1  ;;  %v787_v5 = vmul.f32 0.03125, %v777_v3  ;;  %v798_v6 = vmul.f32 %v794_v0, %v794_v0 }
 0x66c   : > { %v791_v7 = vsub.f32 %v757_v52, %v787_v5  ;;  %v808_v8 = vsel %vm177_vm0, %v798_v6, 0.0  ;;  %v797_v9 = vmul.f32 %v793_v4, %v793_v4 }
 0x66d   : > { %809 = vadd.xlane.f32.xlu0 %v808_v8 }
 0x66e   : > { %v805_v10 = vsel %vm177_vm0, %v797_v9, 0.0  ;;  %v795_v11 = vmul.f32 %v791_v7, %v791_v7 }
 0x66f   : > { %806 = vadd.xlane.f32.xlu1 %v805_v10 }
 0x670   : > { %v799_v12 = vsel %vm177_vm0, %v795_v11, 0.0 }
 0x673   : > { %800 = vadd.xlane.f32.xlu1 %v799_v12 }
 0x6f2   : > { %v804_v13 = vpop.xlane.xlu0 %803 }
 0x6f3   : > { %v812_v14 = vmul.f32 0.03125, %v804_v13 }
 0x6f5   : > { %v816_v15 = vadd.f32 1e-05, %v812_v14 }
 0x6f6   : > { %v810_v16 = vpop.xlane.xlu0 %809 }
 0x6f7   : > { %1112 = vrsqrt.f32 %v816_v15  ;;  %v814_v17 = vmul.f32 0.03125, %v810_v16 }
 0x6f8   : > { %v807_v18 = vpop.xlane.xlu1 %806 }
 0x6f9   : > { %v818_v19 = vadd.f32 1e-05, %v814_v17  ;;  %v813_v20 = vmul.f32 0.03125, %v807_v18 }
 0x6fb   : > { %1114 = vrsqrt.f32 %v818_v19  ;;  %v817_v21 = vadd.f32 1e-05, %v813_v20 }
 0x6fc   : > { %v801_v22 = vpop.xlane.xlu1 %800 }
 0x6fd   : > { %1116 = vrsqrt.f32 %v817_v21  ;;  %v811_v23 = vmul.f32 0.03125, %v801_v22 }
 0x6ff   : > { %v815_v24 = vadd.f32 1e-05, %v811_v23 }
 0x701   : > { %1118 = vrsqrt.f32 %v815_v24 }
 0x704   : > { %v1113_v25 = vpop.eup %1112 }
 0x705   : > { %v824_v27 = vmul.f32 %v1113_v25, %v792_v59 }
 0x707   : > { %v832_v29 = vmul.f32 %v953_v26, %v824_v27 }
 0x708   : > { %v1115_v30 = vpop.eup %1114 }
 0x709   : > { %v840_v31 = vadd.f32 %v954_v28, %v832_v29  ;;  %v826_v34 = vmul.f32 %v1115_v30, %v794_v0 }
 0x70a   : > { %v1117_v32 = vpop.eup %1116 }
 0x70b   : > { %844 = vrot.lane.b32.xlu0 %v840_v31, %s1130_s8  ;;  %v825_v33 = vmul.f32 %v1117_v32, %v793_v4  ;;  %v834_v38 = vmul.f32 %v953_v26, %v826_v34 }
 0x70d   : > { %v833_v35 = vmul.f32 %v953_v26, %v825_v33  ;;  %v842_v41 = vadd.f32 %v954_v28, %v834_v38 }
 0x70e   : > { %v1119_v36 = vpop.eup %1118 }
 0x70f   : > { %v841_v37 = vadd.f32 %v954_v28, %v833_v35  ;;  %v823_v39 = vmul.f32 %v1119_v36, %v791_v7 }
 0x711   : > { %848 = vrot.lane.b32.xlu1 %v841_v37, %s1132_s17  ;;  %v831_v40 = vmul.f32 %v953_v26, %v823_v39 }
 0x713   : > { %v839_v42 = vadd.f32 %v954_v28, %v831_v40 }
 0x715   : > { %852 = vrot.lane.b32.xlu1 %v842_v41, %s1131_s20 }
 0x77d   : > { %v845_v43 = vpop.permute.xlu0 %844 }
 0x77e   : > { %v855_v45 = vsel %vm177_vm0, %v839_v42, %v845_v43 }
 0x783   : > { %v849_v44 = vpop.permute.xlu1 %848 }
 0x784   : > { %v857_v46 = vsel %vm856_vm2, %v855_v45, %v849_v44 }
 0x787   : > { %v853_v47 = vpop.permute.xlu1 %852 }
 0x788   : > { %v859_v48 = vsel %vm858_vm3, %v857_v46, %v853_v47 }
 0x789   : > { %860 = vst [vmem:[%s138_s19] sm:$0xff] %v859_v48 }
 0x78a PF: > { %s12_s9 = sadd.s32 1, %s1126_s9  }
 0x78b   : > { %p9_p4 = scmp.ge.s32.totalorder %s12_s9, 4  }
 0x78d   :  { %11 = sbr.rel (!%p9_p4) target bundleno = 1 (0x1), region = 58 }

</bundles_post_ra>
